<compile_context>
chip_gen: v7x
topology: tpu7x:2x2x1
jax: 0.10.0
libtpu: 0.0.40
codegen_flags: <defaults>
</compile_context>

<pallas_src>
import functools
import math

import jax
import jax.numpy as jnp
from jax.experimental import pallas as pl
from jax.experimental.pallas import tpu as pltpu

BN_EPS = 1e-5
LANE = 128
SUBLANE = 8


# ---------------------------------------------------------------------------
# Kernels
# ---------------------------------------------------------------------------
def fused_head_kernel(x_ref, w1_ref, scale_ref, shift_ref, w2_ref, b2_ref,
                      o_ref, acc_ref):
    """y = relu((x @ W1) * scale + shift); out = y @ W2p + b2p (lane-padded).

    Grid axis 0 tiles the (large) contraction dimension F of the first matmul.
    x / W1 tiles are bf16; accumulation is f32 in VMEM scratch.
    """
    k = pl.program_id(0)

    @pl.when(k == 0)
    def _():
        acc_ref[...] = jnp.zeros_like(acc_ref)

    acc_ref[...] += jnp.dot(x_ref[...], w1_ref[...],
                            preferred_element_type=jnp.float32)

    @pl.when(k == pl.num_programs(0) - 1)
    def _():
        # BatchNorm (eval, running stats) + Linear-1 bias folded into scale/shift.
        y = acc_ref[...] * scale_ref[...] + shift_ref[...]
        h = jnp.maximum(y, 0.0)
        # Matmul-2 (HID x LABELS_PAD, lane-dense output) fused in the finalize step.
        o_ref[...] = (jnp.dot(h, w2_ref[...],
                              preferred_element_type=jnp.float32)
                      + b2_ref[...]).astype(o_ref.dtype)


def partial_matmul_kernel(x_ref, w1_ref, o_ref):
    """Per-core partial sum of x @ W1 over this core's slice of F.

    Grid = (num_cores, k_steps); axis 0 is the core-split axis, axis 1 the
    in-core contraction loop.  Output block (1, B, HID) stays resident across
    the arbitrary axis and is accumulated in place (f32).
    """
    k = pl.program_id(1)

    @pl.when(k == 0)
    def _():
        o_ref[...] = jnp.zeros_like(o_ref)

    o_ref[...] += jnp.dot(x_ref[...], w1_ref[...],
                          preferred_element_type=jnp.float32)[None]


# ---------------------------------------------------------------------------
# Per-generation configuration
# ---------------------------------------------------------------------------
def _detect_tpu_generation():
    try:
        kind = jax.devices()[0].device_kind.lower()
    except Exception:
        return "unknown"
    if "v5" in kind:
        return "v5e"
    if "v6" in kind:
        return "v6e"
    if "7" in kind:
        return "v7x"
    return "unknown"


# K-tile, TensorCore split and scoped-VMEM cap per generation.
# VMEM sizing below uses the *lane-padded* tile sizes (HID=420 -> 512 lanes).
_GEN_CFG = {
    # 1 TC/chip, 128 MiB VMEM, ~0.8 TB/s HBM: tk=8192 already hides step overhead;
    # bigger tiles give <4% and waste scoped VMEM.
    "v5e": dict(tk=8192, tk_per_core_2c=8192, num_cores=1, vmem_cap=96 << 20),
    # 1 TC/chip, 128 MiB VMEM, ~1.4 TB/s HBM.
    "v6e": dict(tk=8192, tk_per_core_2c=8192, num_cores=1, vmem_cap=96 << 20),
    # 2 TC/chip, 64 MiB VMEM per TC, ~3.2 TB/s HBM per TC: split F across both
    # cores (tk=8192/core); single-core fallback uses tk=16384 (2x16 MiB W1 bufs).
    "v7x": dict(tk=16384, tk_per_core_2c=8192, num_cores=2, vmem_cap=56 << 20),
    "unknown": dict(tk=8192, tk_per_core_2c=8192, num_cores=1, vmem_cap=32 << 20),
}


def _round_up(x, m):
    return (x + m - 1) // m * m


def _vmem_limit_bytes(B, tk_eff, hid, labels_pad, cap):
    """Scoped-VMEM request, computed from lane/sublane-padded tile sizes."""
    b_pad = max(SUBLANE, _round_up(B, SUBLANE))
    hid_pad = _round_up(hid, LANE)                 # 420 -> 512 lanes
    tk_pad = _round_up(tk_eff, LANE)
    w1_bufs = 2 * tk_pad * hid_pad * 2             # double-buffered bf16 W1 tile
    x_bufs = 2 * b_pad * tk_pad * 2                # double-buffered bf16 x tile
    acc = b_pad * hid_pad * 4                      # f32 accumulator scratch
    consts = 2 * SUBLANE * hid_pad * 4             # scale + shift rows
    consts += hid_pad * labels_pad * 4 + SUBLANE * labels_pad * 4   # W2 + b2
    out = 2 * b_pad * labels_pad * 4
    need = w1_bufs + x_bufs + acc + consts + out
    # ~25% + 2 MiB headroom (compiler-internal scratch / deeper buffering),
    # floored at the universally-safe 16 MiB, capped per generation.
    return int(min(cap, max(16 << 20, need + need // 4 + (2 << 20))))


# ---------------------------------------------------------------------------
# Wrapper
# ---------------------------------------------------------------------------
@functools.partial(jax.jit,
                   static_argnames=("tk", "num_cores", "vmem_limit_bytes",
                                    "core_parallel"))
def model_head(x, w1_t, b1, gamma, beta, run_mean, run_var, w2_t, b2, *,
               tk=None, num_cores=None, vmem_limit_bytes=None,
               core_parallel=False):
    """x: [B, SEQ, DIM] transformer output. Returns logits [B, LABELS].

    w1_t: [F, HID] (ideally pre-cast to bf16), w2_t: [HID, LABELS] (f32).
    tk / num_cores / vmem_limit_bytes default per detected TPU generation.
    Constraint: F must be divisible by num_cores * min(tk, F // num_cores).
    """
    gen = _detect_tpu_generation()
    cfg = _GEN_CFG[gen]
    if num_cores is None:
        num_cores = cfg["num_cores"]       # v7x -> 2-core split; 1-TC chips -> 1
    if tk is None:
        tk = cfg["tk"] if num_cores == 1 else cfg["tk_per_core_2c"]

    B = x.shape[0]
    # torch.flatten(out, 1); stream the activation in bf16 as well.
    x_flat = x.reshape(B, -1).astype(jnp.bfloat16)
    F = x_flat.shape[1]
    HID = w1_t.shape[1]
    LABELS = w2_t.shape[1]
    LABELS_PAD = _round_up(LABELS, LANE)

    # No-op if already prepared as bf16/f32 at weight-prep time.
    w1_t = w1_t.astype(jnp.bfloat16)
    w2_t = w2_t.astype(jnp.float32)
    # TODO(synk): remaining ~2x HBM lever: store W1 as int8 (v5e/v6e MXU) or fp8
    # (v7x MXU) with per-output-channel scales folded into `scale`; numerics
    # change, so it must be gated behind a flag and re-validated vs f32.

    # Fold BatchNorm1d (eval) + Linear-1 bias: y = acc*scale + shift.
    scale = (gamma * jax.lax.rsqrt(run_var + BN_EPS)).astype(jnp.float32)
    shift = ((b1 - run_mean) * scale + beta).astype(jnp.float32)

    per_core = F // num_cores
    tk_eff = min(tk, per_core)
    assert F % (num_cores * tk_eff) == 0, (
        "contraction dim must be divisible by num_cores * K-tile")
    k_steps = F // (num_cores * tk_eff)

    if vmem_limit_bytes is None:
        vmem_limit_bytes = _vmem_limit_bytes(B, tk_eff, HID, LABELS_PAD,
                                             cfg["vmem_cap"])

    row = lambda v: v.reshape(1, -1)

    # TODO(synk): if a profile still shows exposed DMA at tile boundaries after
    # the tk bump, add pipeline_mode=pl.Buffered(3) on the x / W1 BlockSpecs
    # (one extra W1 tile of VMEM, covered by the headroom in _vmem_limit_bytes).

    if num_cores == 1:
        # Pad W2 / b2 to a lane-dense 128-wide output; slice the logits after.
        w2_pad = jnp.pad(w2_t, ((0, 0), (0, LABELS_PAD - LABELS)))
        b2_pad = jnp.pad(b2.astype(jnp.float32), (0, LABELS_PAD - LABELS))
        cost = pl.CostEstimate(
            flops=2 * B * F * HID + 2 * B * HID * LABELS_PAD,
            transcendentals=0,
            bytes_accessed=(x_flat.size * 2 + F * HID * 2
                            + (HID * LABELS_PAD + 2 * HID + LABELS_PAD) * 4
                            + B * LABELS_PAD * 4))
        out = pl.pallas_call(
            fused_head_kernel,
            out_shape=jax.ShapeDtypeStruct((B, LABELS_PAD), jnp.float32),
            grid_spec=pltpu.PrefetchScalarGridSpec(
                num_scalar_prefetch=0,
                grid=(k_steps,),
                in_specs=[
                    pl.BlockSpec((B, tk_eff), lambda k: (0, k)),        # x tile
                    pl.BlockSpec((tk_eff, HID), lambda k: (k, 0)),      # W1 tile
                    pl.BlockSpec((1, HID), lambda k: (0, 0)),           # scale
                    pl.BlockSpec((1, HID), lambda k: (0, 0)),           # shift
                    pl.BlockSpec((HID, LABELS_PAD), lambda k: (0, 0)),  # W2 (padded)
                    pl.BlockSpec((1, LABELS_PAD), lambda k: (0, 0)),    # b2 (padded)
                ],
                out_specs=pl.BlockSpec((B, LABELS_PAD), lambda k: (0, 0)),
                scratch_shapes=[pltpu.VMEM((B, HID), jnp.float32)],
            ),
            compiler_params=pltpu.CompilerParams(
                dimension_semantics=("arbitrary",),
                vmem_limit_bytes=vmem_limit_bytes),
            cost_estimate=cost,
        )(x_flat, w1_t, row(scale), row(shift), w2_pad, row(b2_pad))
        return out[:, :LABELS]

    # num_cores > 1 (v7x: 2 TensorCores): split F across cores, keep total W1
    # HBM traffic constant, combine partials in a microsecond-scale XLA epilogue.
    cost = pl.CostEstimate(
        flops=2 * B * F * HID,
        transcendentals=0,
        bytes_accessed=(x_flat.size * 2 + F * HID * 2
                        + num_cores * B * HID * 4))
    # TODO(synk): verify with a profile that axis 0 actually shards across both
    # v7x TensorCores; if Mosaic runs it serially, call with core_parallel=True
    # (pltpu.CORE_PARALLEL) or move to pl.core_map over a TensorCore mesh.
    axis0 = pltpu.CORE_PARALLEL if core_parallel else "parallel"
    partials = pl.pallas_call(
        partial_matmul_kernel,
        out_shape=jax.ShapeDtypeStruct((num_cores, B, HID), jnp.float32),
        grid_spec=pltpu.PrefetchScalarGridSpec(
            num_scalar_prefetch=0,
            grid=(num_cores, k_steps),
            in_specs=[
                pl.BlockSpec((B, tk_eff),
                             lambda c, k: (0, c * k_steps + k)),        # x tile
                pl.BlockSpec((tk_eff, HID),
                             lambda c, k: (c * k_steps + k, 0)),        # W1 tile
            ],
            out_specs=pl.BlockSpec((1, B, HID), lambda c, k: (c, 0, 0)),
        ),
        compiler_params=pltpu.CompilerParams(
            dimension_semantics=(axis0, "arbitrary"),
            vmem_limit_bytes=vmem_limit_bytes),
        cost_estimate=cost,
    )(x_flat, w1_t)

    y = partials.sum(axis=0) * scale + shift
    h = jnp.maximum(y, 0.0)
    return h @ w2_t + b2


# ---------------------------------------------------------------------------
# Init helpers / demo
# ---------------------------------------------------------------------------
def xavier_uniform(key, out_features, in_features):
    """Matches torch.nn.init.xavier_uniform_ on a (out, in) Linear weight."""
    bound = math.sqrt(6.0 / (in_features + out_features))
    return jax.random.uniform(key, (out_features, in_features),
                              minval=-bound, maxval=bound, dtype=jnp.float32)


if __name__ == "__main__":
    # Small shapes consistent with the module (scaled down from 512x768 -> 420 -> 9).
    B, SEQ, DIM = 8, 8, 64          # F = 512 stands in for 768*512 = 393216
    HID, LABELS = 420, 9

    key = jax.random.PRNGKey(0)
    k_x, k_w1, k_w2 = jax.random.split(key, 3)

    # "Transformer output" stand-in (the real CodeBERT encoder is frozen / not translated).
    x = jax.random.normal(k_x, (B, SEQ, DIM), dtype=jnp.float32)

    F = SEQ * DIM
    # nn.Linear weights: (out, in), xavier_uniform init, bias = 0.01.
    w1 = xavier_uniform(k_w1, HID, F)
    b1 = jnp.full((HID,), 0.01, dtype=jnp.float32)
    w2 = xavier_uniform(k_w2, LABELS, HID)
    b2 = jnp.full((LABELS,), 0.01, dtype=jnp.float32)
    # BatchNorm1d(420) default params / running stats.
    gamma = jnp.ones((HID,), dtype=jnp.float32)
    beta = jnp.zeros((HID,), dtype=jnp.float32)
    run_mean = jnp.zeros((HID,), dtype=jnp.float32)
    run_var = jnp.ones((HID,), dtype=jnp.float32)

    # Weight prep (done once, not per call): transpose to [in, out], cast W1 to bf16.
    w1_t_bf16 = w1.T.astype(jnp.bfloat16)
    w2_t = w2.T

    args = (x, w1_t_bf16, b1, gamma, beta, run_mean, run_var, w2_t, b2)

    # Auto config for the detected generation (v7x -> 2-core split, else fused 1-core).
    logits_auto = jax.block_until_ready(model_head(*args))
    # Explicit fused single-core path (v5e / v6e style).
    logits_1c = jax.block_until_ready(model_head(*args, num_cores=1, tk=8192))
    # Explicit 2-core split (degrades to a serial loop on 1-TC chips; correctness check).
    logits_2c = jax.block_until_ready(model_head(*args, num_cores=2, tk=8192))

    # Pure-JAX reference using the same bf16-rounded x / W1 (kernel streams bf16,
    # accumulates in f32; BN/bias/second-matmul stay f32).
    x_flat = x.reshape(B, -1).astype(jnp.bfloat16).astype(jnp.float32)
    w1_f = w1_t_bf16.astype(jnp.float32)
    hp = jax.lax.Precision.HIGHEST
    ref = jnp.dot(x_flat, w1_f, precision=hp) + b1
    ref = (ref - run_mean) * jax.lax.rsqrt(run_var + BN_EPS) * gamma + beta
    ref = jnp.maximum(ref, 0.0)
    ref = jnp.dot(ref, w2_t, precision=hp) + b2

    for name, out in (("auto", logits_auto), ("1core", logits_1c),
                      ("2core", logits_2c)):
        assert out.shape == (B, LABELS), name
        assert jnp.allclose(out, ref, atol=1e-2, rtol=1e-2), f"{name} path mismatch"
    assert jnp.allclose(logits_1c, logits_2c, atol=2e-3, rtol=2e-3), "paths disagree"

    print("KERNEL_OK")
</pallas_src>

<mosaic_0001>
module attributes {stable_mosaic.version = 11 : i64} {
  func.func @fused_head_kernel(%arg0: i32, %arg1: memref<8x512xbf16, #tpu.memory_space<vmem>>, %arg2: memref<512x420xbf16, #tpu.memory_space<vmem>>, %arg3: memref<1x420xf32, #tpu.memory_space<vmem>>, %arg4: memref<1x420xf32, #tpu.memory_space<vmem>>, %arg5: memref<420x128xf32, #tpu.memory_space<vmem>>, %arg6: memref<1x128xf32, #tpu.memory_space<vmem>>, %arg7: memref<8x128xf32, #tpu.memory_space<vmem>>, %arg8: memref<8x420xf32, #tpu.memory_space<vmem>>) attributes {dimension_semantics = [#tpu.dimension_semantics<arbitrary>], iteration_bounds = array<i64: 1>, scalar_prefetch = 0 : i64, scratch_operands = 1 : i64, tpu.core_type = #tpu.core_type<tc>, window_params = [{transform_indices = @transform_0, window_bounds = array<i64: 8, 512>}, {transform_indices = @transform_1, window_bounds = array<i64: 512, 420>}, {pipeline_mode = #tpu.pipeline_mode<synchronous>, transform_indices = @transform_2, window_bounds = array<i64: 1, 420>}, {pipeline_mode = #tpu.pipeline_mode<synchronous>, transform_indices = @transform_3, window_bounds = array<i64: 1, 420>}, {pipeline_mode = #tpu.pipeline_mode<synchronous>, transform_indices = @transform_4, window_bounds = array<i64: 420, 128>}, {pipeline_mode = #tpu.pipeline_mode<synchronous>, transform_indices = @transform_5, window_bounds = array<i64: 1, 128>}, {pipeline_mode = #tpu.pipeline_mode<synchronous>, transform_indices = @transform_6, window_bounds = array<i64: 8, 128>}]} {
    %c0_i32 = arith.constant 0 : i32
    %0 = arith.cmpi eq, %arg0, %c0_i32 : i32
    %1 = arith.extui %0 : i1 to i32
    %c0_i32_0 = arith.constant 0 : i32
    %2 = arith.cmpi ne, %1, %c0_i32_0 : i32
    scf.if %2 {
      %cst_10 = arith.constant 0.000000e+00 : f32
      %12 = vector.broadcast %cst_10 : f32 to vector<8x420xf32>
      %c0_11 = arith.constant 0 : index
      %c0_12 = arith.constant 0 : index
      %13 = vector.load %arg8[%c0_11, %c0_12] : memref<8x420xf32, #tpu.memory_space<vmem>>, vector<8x420xf32>
      tpu.vector_store %arg8[%c0_11, %c0_12], %12 {strides = array<i32>} : memref<8x420xf32, #tpu.memory_space<vmem>>, vector<8x420xf32>,
    } else {
    }
    %c0 = arith.constant 0 : index
    %c0_1 = arith.constant 0 : index
    %3 = vector.load %arg8[%c0, %c0_1] : memref<8x420xf32, #tpu.memory_space<vmem>>, vector<8x420xf32>
    %c0_2 = arith.constant 0 : index
    %c0_3 = arith.constant 0 : index
    %4 = vector.load %arg1[%c0_2, %c0_3] : memref<8x512xbf16, #tpu.memory_space<vmem>>, vector<8x512xbf16>
    %c0_4 = arith.constant 0 : index
    %c0_5 = arith.constant 0 : index
    %5 = vector.load %arg2[%c0_4, %c0_5] : memref<512x420xbf16, #tpu.memory_space<vmem>>, vector<512x420xbf16>
    %cst = arith.constant dense<0.000000e+00> : vector<8x420xf32>
    %6 = tpu.matmul %4, %5, %cst {dimension_numbers = #tpu.dot_dimension_numbers<[1], [0], [0], [1], [0, 0, 1, 1], [], []>} : vector<8x512xbf16>, vector<512x420xbf16>, vector<8x420xf32> -> vector<8x420xf32>
    %7 = arith.addf %3, %6 : vector<8x420xf32>
    %c0_6 = arith.constant 0 : index
    %c0_7 = arith.constant 0 : index
    %8 = vector.load %arg8[%c0_6, %c0_7] : memref<8x420xf32, #tpu.memory_space<vmem>>, vector<8x420xf32>
    tpu.vector_store %arg8[%c0_6, %c0_7], %7 {strides = array<i32>} : memref<8x420xf32, #tpu.memory_space<vmem>>, vector<8x420xf32>,
    %c0_i32_8 = arith.constant 0 : i32
    %9 = arith.cmpi eq, %arg0, %c0_i32_8 : i32
    %10 = arith.extui %9 : i1 to i32
    %c0_i32_9 = arith.constant 0 : i32
    %11 = arith.cmpi ne, %10, %c0_i32_9 : i32
    scf.if %11 {
      %c0_10 = arith.constant 0 : index
      %c0_11 = arith.constant 0 : index
      %12 = vector.load %arg8[%c0_10, %c0_11] : memref<8x420xf32, #tpu.memory_space<vmem>>, vector<8x420xf32>
      %c0_12 = arith.constant 0 : index
      %c0_13 = arith.constant 0 : index
      %13 = vector.load %arg3[%c0_12, %c0_13] : memref<1x420xf32, #tpu.memory_space<vmem>>, vector<1x420xf32>
      %14 = vector.broadcast %13 : vector<1x420xf32> to vector<8x420xf32>
      %15 = arith.mulf %12, %14 : vector<8x420xf32>
      %c0_14 = arith.constant 0 : index
      %c0_15 = arith.constant 0 : index
      %16 = vector.load %arg4[%c0_14, %c0_15] : memref<1x420xf32, #tpu.memory_space<vmem>>, vector<1x420xf32>
      %17 = vector.broadcast %16 : vector<1x420xf32> to vector<8x420xf32>
      %18 = arith.addf %15, %17 : vector<8x420xf32>
      %cst_16 = arith.constant 0.000000e+00 : f32
      %19 = vector.broadcast %cst_16 : f32 to vector<8x420xf32>
      %20 = arith.maximumf %18, %19 : vector<8x420xf32>
      %c0_17 = arith.constant 0 : index
      %c0_18 = arith.constant 0 : index
      %21 = vector.load %arg5[%c0_17, %c0_18] : memref<420x128xf32, #tpu.memory_space<vmem>>, vector<420x128xf32>
      %cst_19 = arith.constant dense<0.000000e+00> : vector<8x128xf32>
      %22 = tpu.matmul %20, %21, %cst_19 {dimension_numbers = #tpu.dot_dimension_numbers<[1], [0], [0], [1], [0, 0, 1, 1], [], []>} : vector<8x420xf32>, vector<420x128xf32>, vector<8x128xf32> -> vector<8x128xf32>
      %c0_20 = arith.constant 0 : index
      %c0_21 = arith.constant 0 : index
      %23 = vector.load %arg6[%c0_20, %c0_21] : memref<1x128xf32, #tpu.memory_space<vmem>>, vector<1x128xf32>
      %24 = vector.broadcast %23 : vector<1x128xf32> to vector<8x128xf32>
      %25 = arith.addf %22, %24 : vector<8x128xf32>
      %c0_22 = arith.constant 0 : index
      %c0_23 = arith.constant 0 : index
      %26 = vector.load %arg7[%c0_22, %c0_23] : memref<8x128xf32, #tpu.memory_space<vmem>>, vector<8x128xf32>
      tpu.vector_store %arg7[%c0_22, %c0_23], %25 {strides = array<i32>} : memref<8x128xf32, #tpu.memory_space<vmem>>, vector<8x128xf32>,
    } else {
    }
    return
  }
  func.func @transform_0(%arg0: i32) -> (i32, i32) {
    %c0_i32 = arith.constant 0 : i32
    %c0_i32_0 = arith.constant 0 : i32
    return %c0_i32, %arg0 : i32, i32
  }
  func.func @transform_1(%arg0: i32) -> (i32, i32) {
    %c0_i32 = arith.constant 0 : i32
    %c0_i32_0 = arith.constant 0 : i32
    return %arg0, %c0_i32 : i32, i32
  }
  func.func @transform_2(%arg0: i32) -> (i32, i32) {
    %c0_i32 = arith.constant 0 : i32
    %c0_i32_0 = arith.constant 0 : i32
    %c0_i32_1 = arith.constant 0 : i32
    return %c0_i32, %c0_i32_0 : i32, i32
  }
  func.func @transform_3(%arg0: i32) -> (i32, i32) {
    %c0_i32 = arith.constant 0 : i32
    %c0_i32_0 = arith.constant 0 : i32
    %c0_i32_1 = arith.constant 0 : i32
    return %c0_i32, %c0_i32_0 : i32, i32
  }
  func.func @transform_4(%arg0: i32) -> (i32, i32) {
    %c0_i32 = arith.constant 0 : i32
    %c0_i32_0 = arith.constant 0 : i32
    %c0_i32_1 = arith.constant 0 : i32
    return %c0_i32, %c0_i32_0 : i32, i32
  }
  func.func @transform_5(%arg0: i32) -> (i32, i32) {
    %c0_i32 = arith.constant 0 : i32
    %c0_i32_0 = arith.constant 0 : i32
    %c0_i32_1 = arith.constant 0 : i32
    return %c0_i32, %c0_i32_0 : i32, i32
  }
  func.func @transform_6(%arg0: i32) -> (i32, i32) {
    %c0_i32 = arith.constant 0 : i32
    %c0_i32_0 = arith.constant 0 : i32
    %c0_i32_1 = arith.constant 0 : i32
    return %c0_i32, %c0_i32_0 : i32, i32
  }
}

</mosaic_0001>

<bundles_post_ra>
// kernel: model_head.1
= control target key start
LH: loop header
LB: loop body
LE: loop exit
PB: predicated region body
PF: predicated region fallthrough
CT: control target
= control target key end

     0   :  { %s2357_s0 = inlined_call_operand.vmem [shape: bf16[8,512], index: 0, kind: input, shape index: {}]   ;;  %s2358_s1 = inlined_call_operand.vmem [shape: bf16[512,420], index: 1, kind: input, shape index: {}]   ;;  %s2359_s2 = inlined_call_operand.vmem [shape: f32[1,420], index: 2, kind: input, shape index: {}]   ;;  %s2360_s3 = inlined_call_operand.vmem [shape: f32[1,420], index: 3, kind: input, shape index: {}]   ;;  %s2361_s4 = inlined_call_operand.vmem [shape: f32[420,128], index: 4, kind: input, shape index: {}]   ;;  %s2362_s5 = inlined_call_operand.vmem [shape: f32[1,128], index: 5, kind: input, shape index: {}]   ;;  %s2363_s6 = inlined_call_operand.hbm [shape: f32[8,128], index: 6, kind: output, shape index: {}]  }
   0x1   :  { %v1514_v0 = vld [vmem:[%s2358_s1 + $0x4] ss:$16 sps:$4 sm:$0xff]   ;;  %v1518_v2 = vld [vmem:[%s2358_s1] ss:$16 sps:$4 sm:$0xff]   ;;  %v38_v48 = vld [vmem:[%s2357_s0 + $0x8] sm:$0xff] }
   0x2   :  { %v1516_v1 = vld [vmem:[%s2358_s1 + $0x204] ss:$16 sps:$4 sm:$0xff]   ;;  %821 = vmatprep.subr.bf16.mxu0 %v1514_v0  ;;  %v1519_v3 = vld [vmem:[%s2358_s1 + $0x200] ss:$16 sps:$4 sm:$0xff]   ;;  %v1282_v51 = vcombine.high %v38_v48, %v38_v48 }
   0x3   :  { %862 = vmatprep.subr.bf16.mxu1 %v1516_v1  ;;  %v1520_v4 = vld [vmem:[%s2358_s1 + $0x24] ss:$16 sps:$4 sm:$0xff]   ;;  %822 = vmatpush1.bf16.msra.mxu0 %v1518_v2  ;;  %v1524_v6 = vld [vmem:[%s2358_s1 + $0x20] ss:$16 sps:$4 sm:$0xff]  }
   0x4   :  { %863 = vmatpush1.bf16.msra.mxu1 %v1519_v3  ;;  %v1522_v5 = vld [vmem:[%s2358_s1 + $0x224] ss:$16 sps:$4 sm:$0xff]   ;;  %823 = vmatprep.subr.bf16.mxu0 %v1520_v4  ;;  %v1525_v7 = vld [vmem:[%s2358_s1 + $0x220] ss:$16 sps:$4 sm:$0xff]   ;;  %v1616_v4 = vld [vmem:[%s2358_s1 + $0xc] ss:$16 sps:$4 sm:$0xff]  }
   0x5   :  { %864 = vmatprep.subr.bf16.mxu1 %v1522_v5  ;;  %v1526_v8 = vld [vmem:[%s2358_s1 + $0x44] ss:$16 sps:$4 sm:$0xff]   ;;  %v1530_v10 = vld [vmem:[%s2358_s1 + $0x40] ss:$16 sps:$4 sm:$0xff]   ;;  %894 = vmatprep.mubr.bf16.mxu1 %v1282_v51  ;;  %v1619_v5 = vld [vmem:[%s2358_s1 + $0x20c] ss:$16 sps:$4 sm:$0xff]  }
   0x6   :  { %v1528_v9 = vld [vmem:[%s2358_s1 + $0x244] ss:$16 sps:$4 sm:$0xff]   ;;  %v1531_v11 = vld [vmem:[%s2358_s1 + $0x240] ss:$16 sps:$4 sm:$0xff]  }
   0x7   :  { %824 = vmatpush1.bf16.msra.mxu0 %v1524_v6  ;;  %v1532_v12 = vld [vmem:[%s2358_s1 + $0x64] ss:$16 sps:$4 sm:$0xff]   ;;  %v1536_v14 = vld [vmem:[%s2358_s1 + $0x60] ss:$16 sps:$4 sm:$0xff]  }
   0x8   :  { %865 = vmatpush1.bf16.msra.mxu1 %v1525_v7  ;;  %825 = vmatprep.subr.bf16.mxu0 %v1526_v8  ;;  %v1534_v13 = vld [vmem:[%s2358_s1 + $0x264] ss:$16 sps:$4 sm:$0xff]   ;;  %v1537_v15 = vld [vmem:[%s2358_s1 + $0x260] ss:$16 sps:$4 sm:$0xff]   ;;  %v1981_v7 = vcombine.low %v38_v48, %v38_v48  ;;  %v1614_v8 = vld [vmem:[%s2358_s1 + $0x8] ss:$16 sps:$4 sm:$0xff]  }
   0x9   :  { %866 = vmatprep.subr.bf16.mxu1 %v1528_v9  ;;  %v1538_v16 = vld [vmem:[%s2358_s1 + $0x84] ss:$16 sps:$4 sm:$0xff]   ;;  %v1542_v18 = vld [vmem:[%s2358_s1 + $0x80] ss:$16 sps:$4 sm:$0xff]   ;;  %v1617_v9 = vld [vmem:[%s2358_s1 + $0x208] ss:$16 sps:$4 sm:$0xff]  }
   0xa   :  { %v1540_v17 = vld [vmem:[%s2358_s1 + $0x284] ss:$16 sps:$4 sm:$0xff]   ;;  %v1543_v19 = vld [vmem:[%s2358_s1 + $0x280] ss:$16 sps:$4 sm:$0xff]  }
   0xb   :  { %826 = vmatpush1.bf16.msra.mxu0 %v1530_v10  ;;  %v1544_v20 = vld [vmem:[%s2358_s1 + $0xa4] ss:$16 sps:$4 sm:$0xff]   ;;  %v1548_v22 = vld [vmem:[%s2358_s1 + $0xa0] ss:$16 sps:$4 sm:$0xff]   ;;  %v1622_v10 = vld [vmem:[%s2358_s1 + $0x2c] ss:$16 sps:$4 sm:$0xff]  }
   0xc   :  { %867 = vmatpush1.bf16.msra.mxu1 %v1531_v11  ;;  %827 = vmatprep.subr.bf16.mxu0 %v1532_v12  ;;  %v1546_v21 = vld [vmem:[%s2358_s1 + $0x2a4] ss:$16 sps:$4 sm:$0xff]   ;;  %v1549_v23 = vld [vmem:[%s2358_s1 + $0x2a0] ss:$16 sps:$4 sm:$0xff]   ;;  %v1625_v11 = vld [vmem:[%s2358_s1 + $0x22c] ss:$16 sps:$4 sm:$0xff]  }
   0xd   :  { %868 = vmatprep.subr.bf16.mxu1 %v1534_v13  ;;  %v1550_v24 = vld [vmem:[%s2358_s1 + $0xc4] ss:$16 sps:$4 sm:$0xff]   ;;  %v1554_v26 = vld [vmem:[%s2358_s1 + $0xc0] ss:$16 sps:$4 sm:$0xff]   ;;  %v1620_v12 = vld [vmem:[%s2358_s1 + $0x28] ss:$16 sps:$4 sm:$0xff]  }
   0xe   :  { %v1552_v25 = vld [vmem:[%s2358_s1 + $0x2c4] ss:$16 sps:$4 sm:$0xff]   ;;  %v1555_v27 = vld [vmem:[%s2358_s1 + $0x2c0] ss:$16 sps:$4 sm:$0xff]   ;;  %v1623_v13 = vld [vmem:[%s2358_s1 + $0x228] ss:$16 sps:$4 sm:$0xff]  }
   0xf   :  { %828 = vmatpush1.bf16.msra.mxu0 %v1536_v14  ;;  %v1556_v28 = vld [vmem:[%s2358_s1 + $0xe4] ss:$16 sps:$4 sm:$0xff]   ;;  %v1560_v30 = vld [vmem:[%s2358_s1 + $0xe0] ss:$16 sps:$4 sm:$0xff]   ;;  %v1628_v14 = vld [vmem:[%s2358_s1 + $0x4c] ss:$16 sps:$4 sm:$0xff]  }
  0x10   :  { %869 = vmatpush1.bf16.msra.mxu1 %v1537_v15  ;;  %829 = vmatprep.subr.bf16.mxu0 %v1538_v16  ;;  %v1558_v29 = vld [vmem:[%s2358_s1 + $0x2e4] ss:$16 sps:$4 sm:$0xff]   ;;  %v1561_v31 = vld [vmem:[%s2358_s1 + $0x2e0] ss:$16 sps:$4 sm:$0xff]   ;;  %v1631_v15 = vld [vmem:[%s2358_s1 + $0x24c] ss:$16 sps:$4 sm:$0xff]  }
  0x11   :  { %870 = vmatprep.subr.bf16.mxu1 %v1540_v17  ;;  %v1562_v32 = vld [vmem:[%s2358_s1 + $0x104] ss:$16 sps:$4 sm:$0xff]   ;;  %v1566_v34 = vld [vmem:[%s2358_s1 + $0x100] ss:$16 sps:$4 sm:$0xff]   ;;  %v1626_v16 = vld [vmem:[%s2358_s1 + $0x48] ss:$16 sps:$4 sm:$0xff]  }
  0x12   :  { %v1564_v33 = vld [vmem:[%s2358_s1 + $0x304] ss:$16 sps:$4 sm:$0xff]   ;;  %v1567_v35 = vld [vmem:[%s2358_s1 + $0x300] ss:$16 sps:$4 sm:$0xff]   ;;  %v1629_v17 = vld [vmem:[%s2358_s1 + $0x248] ss:$16 sps:$4 sm:$0xff]  }
  0x13   :  { %830 = vmatpush1.bf16.msra.mxu0 %v1542_v18  ;;  %v1568_v36 = vld [vmem:[%s2358_s1 + $0x124] ss:$16 sps:$4 sm:$0xff]   ;;  %v1572_v38 = vld [vmem:[%s2358_s1 + $0x120] ss:$16 sps:$4 sm:$0xff]   ;;  %v1634_v18 = vld [vmem:[%s2358_s1 + $0x6c] ss:$16 sps:$4 sm:$0xff]  }
  0x14   :  { %871 = vmatpush1.bf16.msra.mxu1 %v1543_v19  ;;  %831 = vmatprep.subr.bf16.mxu0 %v1544_v20  ;;  %v1570_v37 = vld [vmem:[%s2358_s1 + $0x324] ss:$16 sps:$4 sm:$0xff]   ;;  %v1573_v39 = vld [vmem:[%s2358_s1 + $0x320] ss:$16 sps:$4 sm:$0xff]   ;;  %v1637_v19 = vld [vmem:[%s2358_s1 + $0x26c] ss:$16 sps:$4 sm:$0xff]  }
  0x15   :  { %872 = vmatprep.subr.bf16.mxu1 %v1546_v21  ;;  %v1574_v40 = vld [vmem:[%s2358_s1 + $0x144] ss:$16 sps:$4 sm:$0xff]   ;;  %v1578_v42 = vld [vmem:[%s2358_s1 + $0x140] ss:$16 sps:$4 sm:$0xff]   ;;  %v1632_v20 = vld [vmem:[%s2358_s1 + $0x68] ss:$16 sps:$4 sm:$0xff]  }
  0x16   :  { %v1576_v41 = vld [vmem:[%s2358_s1 + $0x344] ss:$16 sps:$4 sm:$0xff]   ;;  %v1579_v43 = vld [vmem:[%s2358_s1 + $0x340] ss:$16 sps:$4 sm:$0xff]   ;;  %v1635_v21 = vld [vmem:[%s2358_s1 + $0x268] ss:$16 sps:$4 sm:$0xff]  }
  0x17   :  { %832 = vmatpush1.bf16.msra.mxu0 %v1548_v22  ;;  %v1580_v44 = vld [vmem:[%s2358_s1 + $0x164] ss:$16 sps:$4 sm:$0xff]   ;;  %v1584_v49 = vld [vmem:[%s2358_s1 + $0x160] ss:$16 sps:$4 sm:$0xff]   ;;  %v1640_v22 = vld [vmem:[%s2358_s1 + $0x8c] ss:$16 sps:$4 sm:$0xff]  }
  0x18   :  { %873 = vmatpush1.bf16.msra.mxu1 %v1549_v23  ;;  %833 = vmatprep.subr.bf16.mxu0 %v1550_v24  ;;  %v1582_v45 = vld [vmem:[%s2358_s1 + $0x364] ss:$16 sps:$4 sm:$0xff]   ;;  %v1585_v50 = vld [vmem:[%s2358_s1 + $0x360] ss:$16 sps:$4 sm:$0xff]   ;;  %v1643_v23 = vld [vmem:[%s2358_s1 + $0x28c] ss:$16 sps:$4 sm:$0xff]  }
  0x19   :  { %874 = vmatprep.subr.bf16.mxu1 %v1552_v25  ;;  %v37_v46 = vld [vmem:[%s2357_s0] sm:$0xff]  ;;  %v1638_v24 = vld [vmem:[%s2358_s1 + $0x88] ss:$16 sps:$4 sm:$0xff]  }
  0x1a   :  { %v1913_v47 = vcombine.high %v37_v46, %v37_v46  ;;  %v1586_v52 = vld [vmem:[%s2358_s1 + $0x184] ss:$16 sps:$4 sm:$0xff]   ;;  %v1590_v54 = vld [vmem:[%s2358_s1 + $0x180] ss:$16 sps:$4 sm:$0xff]   ;;  %v1979_v6 = vcombine.low %v37_v46, %v37_v46  ;;  %v1641_v25 = vld [vmem:[%s2358_s1 + $0x288] ss:$16 sps:$4 sm:$0xff]  }
  0x1b   :  { %834 = vmatpush1.bf16.msra.mxu0 %v1554_v26  ;;  %v1588_v53 = vld [vmem:[%s2358_s1 + $0x384] ss:$16 sps:$4 sm:$0xff]   ;;  %v1591_v55 = vld [vmem:[%s2358_s1 + $0x380] ss:$16 sps:$4 sm:$0xff]   ;;  %v1646_v26 = vld [vmem:[%s2358_s1 + $0xac] ss:$16 sps:$4 sm:$0xff]  }
  0x1c   :  { %875 = vmatpush1.bf16.msra.mxu1 %v1555_v27  ;;  %835 = vmatprep.subr.bf16.mxu0 %v1556_v28  ;;  %v1592_v56 = vld [vmem:[%s2358_s1 + $0x1a4] ss:$16 sps:$4 sm:$0xff]   ;;  %v1596_v58 = vld [vmem:[%s2358_s1 + $0x1a0] ss:$16 sps:$4 sm:$0xff]   ;;  %v1649_v27 = vld [vmem:[%s2358_s1 + $0x2ac] ss:$16 sps:$4 sm:$0xff]  }
  0x1d   :  { %876 = vmatprep.subr.bf16.mxu1 %v1558_v29  ;;  %853 = vmatprep.mubr.bf16.mxu0 %v1913_v47  ;;  %v1594_v57 = vld [vmem:[%s2358_s1 + $0x3a4] ss:$16 sps:$4 sm:$0xff]   ;;  %v1597_v59 = vld [vmem:[%s2358_s1 + $0x3a0] ss:$16 sps:$4 sm:$0xff]   ;;  %v1644_v28 = vld [vmem:[%s2358_s1 + $0xa8] ss:$16 sps:$4 sm:$0xff]  }
  0x1e   :  { %v1598_v60 = vld [vmem:[%s2358_s1 + $0x1c4] ss:$16 sps:$4 sm:$0xff]   ;;  %v1602_v62 = vld [vmem:[%s2358_s1 + $0x1c0] ss:$16 sps:$4 sm:$0xff]   ;;  %v1647_v29 = vld [vmem:[%s2358_s1 + $0x2a8] ss:$16 sps:$4 sm:$0xff]  }
  0x1f   :  { %836 = vmatpush1.bf16.msra.mxu0 %v1560_v30  ;;  %v1600_v61 = vld [vmem:[%s2358_s1 + $0x3c4] ss:$16 sps:$4 sm:$0xff]   ;;  %v1603_v63 = vld [vmem:[%s2358_s1 + $0x3c0] ss:$16 sps:$4 sm:$0xff]   ;;  %v1652_v30 = vld [vmem:[%s2358_s1 + $0xcc] ss:$16 sps:$4 sm:$0xff]  }
  0x20   :  { %877 = vmatpush1.bf16.msra.mxu1 %v1561_v31  ;;  %837 = vmatprep.subr.bf16.mxu0 %v1562_v32  ;;  %v1604_v0 = vld [vmem:[%s2358_s1 + $0x1e4] ss:$16 sps:$4 sm:$0xff]   ;;  %v1608_v2 = vld [vmem:[%s2358_s1 + $0x1e0] ss:$16 sps:$4 sm:$0xff]   ;;  %v1655_v31 = vld [vmem:[%s2358_s1 + $0x2cc] ss:$16 sps:$4 sm:$0xff]  }
  0x21   :  { %878 = vmatprep.subr.bf16.mxu1 %v1564_v33  ;;  %v1606_v1 = vld [vmem:[%s2358_s1 + $0x3e4] ss:$16 sps:$4 sm:$0xff]   ;;  %v1609_v3 = vld [vmem:[%s2358_s1 + $0x3e0] ss:$16 sps:$4 sm:$0xff]   ;;  %v1650_v32 = vld [vmem:[%s2358_s1 + $0xc8] ss:$16 sps:$4 sm:$0xff]  }
  0x22   :  { %v1653_v33 = vld [vmem:[%s2358_s1 + $0x2c8] ss:$16 sps:$4 sm:$0xff]  }
  0x23   :  { %838 = vmatpush1.bf16.msra.mxu0 %v1566_v34  ;;  %v1658_v34 = vld [vmem:[%s2358_s1 + $0xec] ss:$16 sps:$4 sm:$0xff]  }
  0x24   :  { %879 = vmatpush1.bf16.msra.mxu1 %v1567_v35  ;;  %839 = vmatprep.subr.bf16.mxu0 %v1568_v36  ;;  %v1661_v35 = vld [vmem:[%s2358_s1 + $0x2ec] ss:$16 sps:$4 sm:$0xff]  }
  0x25   :  { %880 = vmatprep.subr.bf16.mxu1 %v1570_v37 }
  0x27   :  { %840 = vmatpush1.bf16.msra.mxu0 %v1572_v38 }
  0x28   :  { %881 = vmatpush1.bf16.msra.mxu1 %v1573_v39  ;;  %841 = vmatprep.subr.bf16.mxu0 %v1574_v40 }
  0x29   :  { %882 = vmatprep.subr.bf16.mxu1 %v1576_v41 }
  0x2b   :  { %842 = vmatpush1.bf16.msra.mxu0 %v1578_v42 }
  0x2c   :  { %883 = vmatpush1.bf16.msra.mxu1 %v1579_v43  ;;  %843 = vmatprep.subr.bf16.mxu0 %v1580_v44 }
  0x2d   :  { %884 = vmatprep.subr.bf16.mxu1 %v1582_v45 }
  0x2f   :  { %844 = vmatpush1.bf16.msra.mxu0 %v1584_v49 }
  0x30   :  { %885 = vmatpush1.bf16.msra.mxu1 %v1585_v50  ;;  %845 = vmatprep.subr.bf16.mxu0 %v1586_v52 }
  0x31   :  { %886 = vmatprep.subr.bf16.mxu1 %v1588_v53 }
  0x33   :  { %846 = vmatpush1.bf16.msra.mxu0 %v1590_v54 }
  0x34   :  { %887 = vmatpush1.bf16.msra.mxu1 %v1591_v55  ;;  %847 = vmatprep.subr.bf16.mxu0 %v1592_v56 }
  0x35   :  { %888 = vmatprep.subr.bf16.mxu1 %v1594_v57 }
  0x37   :  { %848 = vmatpush1.bf16.msra.mxu0 %v1596_v58 }
  0x38   :  { %889 = vmatpush1.bf16.msra.mxu1 %v1597_v59  ;;  %849 = vmatprep.subr.bf16.mxu0 %v1598_v60 }
  0x39   :  { %890 = vmatprep.subr.bf16.mxu1 %v1600_v61 }
  0x3b   :  { %850 = vmatpush1.bf16.msra.mxu0 %v1602_v62 }
  0x3c   :  { %891 = vmatpush1.bf16.msra.mxu1 %v1603_v63  ;;  %851 = vmatprep.subr.bf16.mxu0 %v1604_v0 }
  0x3d   :  { %892 = vmatprep.subr.bf16.mxu1 %v1606_v1 }
  0x3f   :  { %852 = vmatpush1.bf16.msra.mxu0 %v1608_v2 }
  0x40   :  { %893 = vmatpush1.bf16.msra.mxu1 %v1609_v3  ;;  %903 = vmatprep.subr.bf16.mxu0 %v1616_v4 }
  0x41   :  { %944 = vmatprep.subr.bf16.mxu1 %v1619_v5 }
  0x42   :  { %854 = vmatmul.mubr.bf16.vlgmr.msra.gmra.mrb[0].mxu0 %v1979_v6 }
  0x43   :  { %895 = vmatmul.mubr.bf16.vlgmr.msra.gmra.mrb[0].mxu1 %v1981_v7  ;;  %904 = vmatpush1.bf16.msra.mxu0 %v1614_v8 }
  0x44   :  { %945 = vmatpush1.bf16.msra.mxu1 %v1617_v9  ;;  %905 = vmatprep.subr.bf16.mxu0 %v1622_v10 }
  0x45   :  { %946 = vmatprep.subr.bf16.mxu1 %v1625_v11  ;;  %935 = vmatprep.mubr.bf16.mxu0 %v1913_v47 }
  0x46   :  { %976 = vmatprep.mubr.bf16.mxu1 %v1282_v51 }
  0x47   :  { %906 = vmatpush1.bf16.msra.mxu0 %v1620_v12 }
  0x48   :  { %947 = vmatpush1.bf16.msra.mxu1 %v1623_v13  ;;  %907 = vmatprep.subr.bf16.mxu0 %v1628_v14 }
  0x49   :  { %948 = vmatprep.subr.bf16.mxu1 %v1631_v15 }
  0x4b   :  { %908 = vmatpush1.bf16.msra.mxu0 %v1626_v16 }
  0x4c   :  { %949 = vmatpush1.bf16.msra.mxu1 %v1629_v17  ;;  %909 = vmatprep.subr.bf16.mxu0 %v1634_v18 }
  0x4d   :  { %950 = vmatprep.subr.bf16.mxu1 %v1637_v19 }
  0x4f   :  { %910 = vmatpush1.bf16.msra.mxu0 %v1632_v20 }
  0x50   :  { %951 = vmatpush1.bf16.msra.mxu1 %v1635_v21  ;;  %911 = vmatprep.subr.bf16.mxu0 %v1640_v22 }
  0x51   :  { %952 = vmatprep.subr.bf16.mxu1 %v1643_v23 }
  0x53   :  { %912 = vmatpush1.bf16.msra.mxu0 %v1638_v24 }
  0x54   :  { %953 = vmatpush1.bf16.msra.mxu1 %v1641_v25  ;;  %913 = vmatprep.subr.bf16.mxu0 %v1646_v26 }
  0x55   :  { %954 = vmatprep.subr.bf16.mxu1 %v1649_v27 }
  0x57   :  { %914 = vmatpush1.bf16.msra.mxu0 %v1644_v28 }
  0x58   :  { %955 = vmatpush1.bf16.msra.mxu1 %v1647_v29  ;;  %915 = vmatprep.subr.bf16.mxu0 %v1652_v30 }
  0x59   :  { %956 = vmatprep.subr.bf16.mxu1 %v1655_v31 }
  0x5a   :  { %11 = vsyncpa [#allocation4], 0  ;;  %v1656_v36 = vld [vmem:[%s2358_s1 + $0xe8] ss:$16 sps:$4 sm:$0xff]   ;;  %v1664_v38 = vld [vmem:[%s2358_s1 + $0x10c] ss:$16 sps:$4 sm:$0xff]  }
  0x5b   :  { %916 = vmatpush1.bf16.msra.mxu0 %v1650_v32  ;;  %v1659_v37 = vld [vmem:[%s2358_s1 + $0x2e8] ss:$16 sps:$4 sm:$0xff]   ;;  %v1667_v39 = vld [vmem:[%s2358_s1 + $0x30c] ss:$16 sps:$4 sm:$0xff]   ;;  %v1073_v4 = vld [vmem:[%s2361_s4 + $0x80] sm:$0xff]  ;;  %vm31_vm0 = vcmask 293888  }
  0x5c   :  { %957 = vmatpush1.bf16.msra.mxu1 %v1653_v33  ;;  %917 = vmatprep.subr.bf16.mxu0 %v1658_v34  ;;  %v1662_v40 = vld [vmem:[%s2358_s1 + $0x108] ss:$16 sps:$4 sm:$0xff]   ;;  %v1670_v42 = vld [vmem:[%s2358_s1 + $0x12c] ss:$16 sps:$4 sm:$0xff]   ;;  %v1057_v11 = vld [vmem:[%s2361_s4] sm:$0xff]  ;;  %vm1120_vm1 = vcmask 1043456  }
  0x5d   :  { %958 = vmatprep.subr.bf16.mxu1 %v1661_v35  ;;  %v1665_v41 = vld [vmem:[%s2358_s1 + $0x308] ss:$16 sps:$4 sm:$0xff]   ;;  %v1673_v43 = vld [vmem:[%s2358_s1 + $0x32c] ss:$16 sps:$4 sm:$0xff]   ;;  %v1075_v13 = vld [vmem:[%s2361_s4 + $0x90] sm:$0xff] }
  0x5e   :  { %v1668_v44 = vld [vmem:[%s2358_s1 + $0x128] ss:$16 sps:$4 sm:$0xff]   ;;  %v1676_v46 = vld [vmem:[%s2358_s1 + $0x14c] ss:$16 sps:$4 sm:$0xff]   ;;  %v1059_v17 = vld [vmem:[%s2361_s4 + $0x10] sm:$0xff] }
  0x5f   :  { %918 = vmatpush1.bf16.msra.mxu0 %v1656_v36  ;;  %v1671_v45 = vld [vmem:[%s2358_s1 + $0x328] ss:$16 sps:$4 sm:$0xff]   ;;  %v1679_v47 = vld [vmem:[%s2358_s1 + $0x34c] ss:$16 sps:$4 sm:$0xff]   ;;  %v1077_v19 = vld [vmem:[%s2361_s4 + $0xa0] sm:$0xff] }
  0x60   :  { %959 = vmatpush1.bf16.msra.mxu1 %v1659_v37  ;;  %919 = vmatprep.subr.bf16.mxu0 %v1664_v38  ;;  %v1674_v48 = vld [vmem:[%s2358_s1 + $0x148] ss:$16 sps:$4 sm:$0xff]   ;;  %v1682_v50 = vld [vmem:[%s2358_s1 + $0x16c] ss:$16 sps:$4 sm:$0xff]   ;;  %v1061_v23 = vld [vmem:[%s2361_s4 + $0x20] sm:$0xff] }
  0x61   :  { %960 = vmatprep.subr.bf16.mxu1 %v1667_v39  ;;  %v1677_v49 = vld [vmem:[%s2358_s1 + $0x348] ss:$16 sps:$4 sm:$0xff]   ;;  %v1685_v51 = vld [vmem:[%s2358_s1 + $0x36c] ss:$16 sps:$4 sm:$0xff]   ;;  %v1063_v27 = vld [vmem:[%s2361_s4 + $0x30] sm:$0xff] }
  0x62   :  { %v1680_v52 = vld [vmem:[%s2358_s1 + $0x168] ss:$16 sps:$4 sm:$0xff]   ;;  %v1688_v54 = vld [vmem:[%s2358_s1 + $0x18c] ss:$16 sps:$4 sm:$0xff]   ;;  %v1081_v30 = vld [vmem:[%s2361_s4 + $0xc0] sm:$0xff] }
  0x63   :  { %920 = vmatpush1.bf16.msra.mxu0 %v1662_v40  ;;  %v1683_v53 = vld [vmem:[%s2358_s1 + $0x368] ss:$16 sps:$4 sm:$0xff]   ;;  %v1691_v55 = vld [vmem:[%s2358_s1 + $0x38c] ss:$16 sps:$4 sm:$0xff]   ;;  %v1065_v33 = vld [vmem:[%s2361_s4 + $0x40] sm:$0xff] }
  0x64   :  { %961 = vmatpush1.bf16.msra.mxu1 %v1665_v41  ;;  %921 = vmatprep.subr.bf16.mxu0 %v1670_v42  ;;  %v1686_v56 = vld [vmem:[%s2358_s1 + $0x188] ss:$16 sps:$4 sm:$0xff]   ;;  %v1694_v58 = vld [vmem:[%s2358_s1 + $0x1ac] ss:$16 sps:$4 sm:$0xff]   ;;  %v1083_v36 = vld [vmem:[%s2361_s4 + $0xd0] sm:$0xff] }
  0x65   :  { %962 = vmatprep.subr.bf16.mxu1 %v1673_v43  ;;  %v1689_v57 = vld [vmem:[%s2358_s1 + $0x388] ss:$16 sps:$4 sm:$0xff]   ;;  %v1697_v59 = vld [vmem:[%s2358_s1 + $0x3ac] ss:$16 sps:$4 sm:$0xff]   ;;  %v1067_v39 = vld [vmem:[%s2361_s4 + $0x50] sm:$0xff] }
  0x66   :  { %v1692_v60 = vld [vmem:[%s2358_s1 + $0x1a8] ss:$16 sps:$4 sm:$0xff]   ;;  %v1700_v62 = vld [vmem:[%s2358_s1 + $0x1cc] ss:$16 sps:$4 sm:$0xff]   ;;  %v1085_v42 = vld [vmem:[%s2361_s4 + $0xe0] sm:$0xff] }
  0x67   :  { %922 = vmatpush1.bf16.msra.mxu0 %v1668_v44  ;;  %v1695_v61 = vld [vmem:[%s2358_s1 + $0x3a8] ss:$16 sps:$4 sm:$0xff]   ;;  %v1703_v63 = vld [vmem:[%s2358_s1 + $0x3cc] ss:$16 sps:$4 sm:$0xff]  }
  0x68   :  { %963 = vmatpush1.bf16.msra.mxu1 %v1671_v45  ;;  %923 = vmatprep.subr.bf16.mxu0 %v1676_v46  ;;  %v1698_v0 = vld [vmem:[%s2358_s1 + $0x1c8] ss:$16 sps:$4 sm:$0xff]   ;;  %v1706_v2 = vld [vmem:[%s2358_s1 + $0x1ec] ss:$16 sps:$4 sm:$0xff]   ;;  %v1069_v45 = vld [vmem:[%s2361_s4 + $0x60] sm:$0xff] }
  0x69   :  { %964 = vmatprep.subr.bf16.mxu1 %v1679_v47  ;;  %v1701_v1 = vld [vmem:[%s2358_s1 + $0x3c8] ss:$16 sps:$4 sm:$0xff]   ;;  %v1709_v3 = vld [vmem:[%s2358_s1 + $0x3ec] ss:$16 sps:$4 sm:$0xff]  }
  0x6a   :  { %v1074_v5 = vld [vmem:[%s2361_s4 + $0x88] sm:$0xff]  ;;  %v1076_v14 = vld [vmem:[%s2361_s4 + $0x98] sm:$0xff] }
  0x6b   :  { %924 = vmatpush1.bf16.msra.mxu0 %v1674_v48  ;;  %v1704_v8 = vld [vmem:[%s2358_s1 + $0x1e8] ss:$16 sps:$4 sm:$0xff]   ;;  %v1449_v10 = vpack.c.bf16 %v1074_v5, %v1073_v4  ;;  %v1453_v16 = vpack.c.bf16 %v1076_v14, %v1075_v13  ;;  %v1087_v48 = vld [vmem:[%s2361_s4 + $0xf0] sm:$0xff] }
  0x6c   :  { %965 = vmatpush1.bf16.msra.mxu1 %v1677_v49  ;;  %925 = vmatprep.subr.bf16.mxu0 %v1682_v50  ;;  %v1707_v9 = vld [vmem:[%s2358_s1 + $0x3e8] ss:$16 sps:$4 sm:$0xff]   ;;  %v1071_v50 = vld [vmem:[%s2361_s4 + $0x70] sm:$0xff] }
  0x6d   :  { %966 = vmatprep.subr.bf16.mxu1 %v1685_v51  ;;  %v1058_v12 = vld [vmem:[%s2361_s4 + $0x8] sm:$0xff]  ;;  %v1060_v18 = vld [vmem:[%s2361_s4 + $0x18] sm:$0xff] }
  0x6e   :  { %v1451_v15 = vpack.c.bf16 %v1058_v12, %v1057_v11  ;;  %v1078_v20 = vld [vmem:[%s2361_s4 + $0xa8] sm:$0xff]  ;;  %v1455_v21 = vpack.c.bf16 %v1060_v18, %v1059_v17  ;;  %v1064_v28 = vld [vmem:[%s2361_s4 + $0x38] sm:$0xff]  ;;  %v1101_v12 = vld [vmem:[%s2361_s4 + $0x160] sm:$0xff] }
  0x6f   :  { %926 = vmatpush1.bf16.msra.mxu0 %v1680_v52  ;;  %v1457_v22 = vpack.c.bf16 %v1078_v20, %v1077_v19  ;;  %v1062_v24 = vld [vmem:[%s2361_s4 + $0x28] sm:$0xff]  ;;  %v1463_v29 = vpack.c.bf16 %v1064_v28, %v1063_v27  ;;  %v1084_v37 = vld [vmem:[%s2361_s4 + $0xd8] sm:$0xff]  ;;  %v1105_v18 = vld [vmem:[%s2361_s4 + $0x180] sm:$0xff] }
  0x70   :  { %967 = vmatpush1.bf16.msra.mxu1 %v1683_v53  ;;  %927 = vmatprep.subr.bf16.mxu0 %v1688_v54  ;;  %v1459_v25 = vpack.c.bf16 %v1062_v24, %v1061_v23  ;;  %v1082_v31 = vld [vmem:[%s2361_s4 + $0xc8] sm:$0xff]  ;;  %v1469_v38 = vpack.c.bf16 %v1084_v37, %v1083_v36  ;;  %v1068_v40 = vld [vmem:[%s2361_s4 + $0x58] sm:$0xff]  ;;  %v1089_v54 = vld [vmem:[%s2361_s4 + $0x100] sm:$0xff] }
  0x71   :  { %968 = vmatprep.subr.bf16.mxu1 %v1691_v55  ;;  %v1465_v32 = vpack.c.bf16 %v1082_v31, %v1081_v30  ;;  %v1066_v34 = vld [vmem:[%s2361_s4 + $0x48] sm:$0xff]  ;;  %v1471_v41 = vpack.c.bf16 %v1068_v40, %v1067_v39  ;;  %v1088_v49 = vld [vmem:[%s2361_s4 + $0xf8] sm:$0xff]  ;;  %v1109_v24 = vld [vmem:[%s2361_s4 + $0x1a0] sm:$0xf] }
  0x72   :  { %v1467_v35 = vpack.c.bf16 %v1066_v34, %v1065_v33  ;;  %v1086_v43 = vld [vmem:[%s2361_s4 + $0xe8] sm:$0xff]  ;;  %v1477_v51 = vpack.c.bf16 %v1088_v49, %v1087_v48  ;;  %v1072_v52 = vld [vmem:[%s2361_s4 + $0x78] sm:$0xff]  ;;  %v1027_v30 = vld [vmem:[%s2360_s3] sm:$0xf] }
  0x73   :  { %928 = vmatpush1.bf16.msra.mxu0 %v1686_v56  ;;  %v1473_v44 = vpack.c.bf16 %v1086_v43, %v1085_v42  ;;  %v1070_v46 = vld [vmem:[%s2361_s4 + $0x68] sm:$0xff]  ;;  %v1479_v53 = vpack.c.bf16 %v1072_v52, %v1071_v50  ;;  %v1091_v56 = vld [vmem:[%s2361_s4 + $0x110] sm:$0xff] }
  0x74   :  { %969 = vmatpush1.bf16.msra.mxu1 %v1689_v57  ;;  %929 = vmatprep.subr.bf16.mxu0 %v1694_v58  ;;  %v1475_v47 = vpack.c.bf16 %v1070_v46, %v1069_v45  ;;  %v1090_v55 = vld [vmem:[%s2361_s4 + $0x108] sm:$0xff]  ;;  %v1734_v57 = vmov 0.0|0.0  }
  0x75   :  { %970 = vmatprep.subr.bf16.mxu1 %v1697_v59  ;;  %v1482_v58 = vpack.c.bf16 %v1090_v55, %v1089_v54  ;;  %v1092_v59 = vld [vmem:[%s2361_s4 + $0x118] sm:$0xff]  ;;  %v1098_v4 = vld [vmem:[%s2361_s4 + $0x148] sm:$0xff] }
  0x76   :  { %v1102_v13 = vld [vmem:[%s2361_s4 + $0x168] sm:$0xff] }
  0x77   :  { %930 = vmatpush1.bf16.msra.mxu0 %v1692_v60  ;;  %v1485_v60 = vpack.c.bf16 %v1092_v59, %v1091_v56  ;;  %v1500_v14 = vpack.c.bf16 %v1102_v13, %v1101_v12  ;;  %v1106_v19 = vld [vmem:[%s2361_s4 + $0x188] sm:$0xff] }
  0x78   :  { %971 = vmatpush1.bf16.msra.mxu1 %v1695_v61  ;;  %931 = vmatprep.subr.bf16.mxu0 %v1700_v62  ;;  %v1093_v61 = vld [vmem:[%s2361_s4 + $0x120] sm:$0xff]  ;;  %v1094_v62 = vld [vmem:[%s2361_s4 + $0x128] sm:$0xff]  ;;  %v1506_v20 = vpack.c.bf16 %v1106_v19, %v1105_v18 }
  0x79   :  { %972 = vmatprep.subr.bf16.mxu1 %v1703_v63  ;;  %v1488_v63 = vpack.c.bf16 %v1094_v62, %v1093_v61 }
  0x7b   :  { %932 = vmatpush1.bf16.msra.mxu0 %v1698_v0  ;;  %v1095_v0 = vld [vmem:[%s2361_s4 + $0x130] sm:$0xff] }
  0x7c   :  { %973 = vmatpush1.bf16.msra.mxu1 %v1701_v1  ;;  %933 = vmatprep.subr.bf16.mxu0 %v1706_v2  ;;  %v1096_v1 = vld [vmem:[%s2361_s4 + $0x138] sm:$0xff] }
  0x7d   :  { %974 = vmatprep.subr.bf16.mxu1 %v1709_v3  ;;  %v1491_v2 = vpack.c.bf16 %v1096_v1, %v1095_v0  ;;  %v1097_v3 = vld [vmem:[%s2361_s4 + $0x140] sm:$0xff] }
  0x7e   :  { %v1494_v5 = vpack.c.bf16 %v1098_v4, %v1097_v3 }
  0x7f   :  { %934 = vmatpush1.bf16.msra.mxu0 %v1704_v8  ;;  %v1735_v8 = vmov 0.0  }
  0x80   :  { %975 = vmatpush1.bf16.msra.mxu1 %v1707_v9  ;;  %1450 = vmatprep.subr.bf16.mxu0 %v1449_v10  ;;  %32 = vst.msk [vmem:[#allocation2 + $0x18] sm:$0xff] %vm31_vm0, %v1735_v8  ;;  %v1099_v9 = vld [vmem:[%s2361_s4 + $0x150] sm:$0xff]  ;;  %v1100_v10 = vld [vmem:[%s2361_s4 + $0x158] sm:$0xff] }
  0x81   :  { %1481 = vmatprep.subr.bf16.mxu1 %v1734_v57  ;;  %v1497_v11 = vpack.c.bf16 %v1100_v10, %v1099_v9 }
  0x82   :  { %936 = vmatmul.mubr.bf16.vlgmr.msra.gmra.mrb[4].mxu0 %v1979_v6  ;;  %v1079_v6 = vld [vmem:[%s2361_s4 + $0xb0] sm:$0xff] }
  0x83   :  { %977 = vmatmul.mubr.bf16.vlgmr.msra.gmra.mrb[4].mxu1 %v1981_v7  ;;  %1452 = vmatpush3.bf16.msra.mxu0 %v1451_v15  ;;  %v1080_v7 = vld [vmem:[%s2361_s4 + $0xb8] sm:$0xff]  ;;  %v1103_v15 = vld [vmem:[%s2361_s4 + $0x170] sm:$0xff] }
  0x84   :  { %1454 = vmatprep.subr.bf16.mxu0 %v1453_v16  ;;  %v1461_v26 = vpack.c.bf16 %v1080_v7, %v1079_v6  ;;  %1483 = vmatpush1.bf16.msra.mxu1 %v1482_v58  ;;  %v1104_v16 = vld [vmem:[%s2361_s4 + $0x178] sm:$0xff] }
  0x85   :  { %1484 = vmatprep.subr.bf16.mxu1 %v1734_v57  ;;  %v1503_v17 = vpack.c.bf16 %v1104_v16, %v1103_v15  ;;  %v1411_v15 = vld [vmem:[%s2362_s5] ss:$0 sm:$0xff] }
  0x87   :  { %1456 = vmatpush3.bf16.msra.mxu0 %v1455_v21  ;;  %v1107_v21 = vld [vmem:[%s2361_s4 + $0x190] sm:$0xff] }
  0x88   :  { %1458 = vmatprep.subr.bf16.mxu0 %v1457_v22  ;;  %1486 = vmatpush1.bf16.msra.mxu1 %v1485_v60  ;;  %v1108_v22 = vld [vmem:[%s2361_s4 + $0x198] sm:$0xff]  ;;  %s1736_s4 = smov [#allocation3]  }
  0x89   :  { %1487 = vmatprep.subr.bf16.mxu1 %v1734_v57  ;;  %v1509_v23 = vpack.c.bf16 %v1108_v22, %v1107_v21  ;;  %s1271_s16 = sshll.u32 %s1736_s4, 4  ;;  %s1272_s16 = int_to_ptr.vmem [resolvable:$true] %s1271_s16 }
  0x8a   :  { %s1710_s17 = scalar_lea.vmem %s1272_s16, 128  ;;  %p1715_p1 = scmp.lt.s32.totalorder %s1272_s16, %s1272_s16 }
  0x8b   :  { %1460 = vmatpush3.bf16.msra.mxu0 %v1459_v25  ;;  %v1003_v25 = vlaneseq  ;;  %p1711_p0 = scmp.ne.s32.totalorder %s1272_s16, %s1710_s17  ;;  %p1716_p2 = scmp.lt.s32.totalorder %s1710_s17, %s1710_s17 }
  0x8c   :  { %1462 = vmatprep.subr.bf16.mxu0 %v1461_v26  ;;  %1489 = vmatpush1.bf16.msra.mxu1 %v1488_v63  ;;  %v1001_v26 = vld [vmem:[%s2359_s2] sm:$0xf] }
  0x8d   :  { %1490 = vmatprep.subr.bf16.mxu1 %v1734_v57  ;;  %v1004_v6 = vshrl.u32 %v1003_v25, 7  ;;  %p1717_p3 = por %p1716_p2, %p1715_p1 }
  0x8f   :  { %1464 = vmatpush3.bf16.msra.mxu0 %v1463_v29  ;;  %v1005_v7 = vsub.s32 0, %v1004_v6  ;;  %v1009_v27 = vsub.s32 1, %v1004_v6  ;;  %v1013_v60 = vsub.s32 2, %v1004_v6  ;;  %v1017_v62 = vsub.s32 3, %v1004_v6  ;;  %p1718_p4 = pnand %p1717_p3, %p1711_p0 }
  0x90   :  { %1466 = vmatprep.subr.bf16.mxu0 %v1465_v32  ;;  %1492 = vmatpush1.bf16.msra.mxu1 %v1491_v2 }
  0x91   :  { %1493 = vmatprep.subr.bf16.mxu1 %v1734_v57  ;;  %v1006_v34 = vrot.slane %v1001_v26, %v1005_v7  ;;  %v1036_v42 = vrot.slane %v1027_v30, %v1009_v27  ;;  %v1014_v63 = vrot.slane %v1001_v26, %v1013_v60  ;;  %v1018_v0 = vrot.slane %v1001_v26, %v1017_v62 }
  0x92   :  { %v1040_v2 = vrot.slane %v1027_v30, %v1013_v60  ;;  %v1044_v3 = vrot.slane %v1027_v30, %v1017_v62 }
  0x93   :  { %1468 = vmatpush3.bf16.msra.mxu0 %v1467_v35 }
  0x94   :  { %1470 = vmatprep.subr.bf16.mxu0 %v1469_v38  ;;  %1495 = vmatpush1.bf16.msra.mxu1 %v1494_v5  ;;  %v1010_v38 = vrot.slane %v1001_v26, %v1009_v27 }
  0x95   :  { %1496 = vmatprep.subr.bf16.mxu1 %v1734_v57 }
  0x97   :  { %1472 = vmatpush3.bf16.msra.mxu0 %v1471_v41  ;;  %v1032_v41 = vrot.slane %v1027_v30, %v1005_v7 }
  0x98   :  { %1474 = vmatprep.subr.bf16.mxu0 %v1473_v44  ;;  %1498 = vmatpush1.bf16.msra.mxu1 %v1497_v11 }
  0x99   :  { %1499 = vmatprep.subr.bf16.mxu1 %v1734_v57 }
  0x9b   :  { %1476 = vmatpush3.bf16.msra.mxu0 %v1475_v47 }
  0x9c   :  { %1478 = vmatprep.subr.bf16.mxu0 %v1477_v51  ;;  %1501 = vmatpush1.bf16.msra.mxu1 %v1500_v14 }
  0x9d   :  { %1502 = vmatprep.subr.bf16.mxu1 %v1734_v57 }
  0x9f   :  { %1480 = vmatpush3.bf16.msra.mxu0 %v1479_v53  ;;  %v36_v53 = vld [vmem:[#allocation2 + $0x18] sm:$0xff] }
  0xa0   :  { %1504 = vmatpush1.bf16.msra.mxu1 %v1503_v17 }
  0xa1   :  { %1505 = vmatprep.subr.bf16.mxu1 %v1734_v57 }
  0xa4   :  { %1507 = vmatpush1.bf16.msra.mxu1 %v1506_v20 }
  0xa5   :  { %1508 = vmatprep.subr.bf16.mxu1 %v1734_v57 }
  0xa8   :  { %1510 = vmatpush1.bf16.msra.mxu1 %v1509_v23 }
  0xa9   :  { %1234 = vmatprep.subr.mxu1 %v1735_v8 }
  0xac   :  { %1412 = vmatpush1.msk.msra.mxu1 %vm1120_vm1, %v1109_v24 }
 0x115   :  { %v855_v28 = vpop.f32.mrb[0].mxu0 }
 0x116   :  { %v896_v29 = vpop.f32.mrb[0].mxu1  ;;  %v857_v32 = vpop.f32.mrb[1].mxu0 }
 0x117   :  { %v897_v31 = vadd.f32 %v896_v29, %v855_v28  ;;  %v898_v33 = vpop.f32.mrb[1].mxu1  ;;  %v859_v36 = vpop.f32.mrb[2].mxu0 }
 0x118   :  { %v899_v35 = vadd.f32 %v898_v33, %v857_v32  ;;  %v900_v37 = vpop.f32.mrb[2].mxu1  ;;  %v860_v39 = vpop.f32.mrb[3].mxu0 }
 0x119   :  { %v901_v40 = vpop.f32.mrb[3].mxu1  ;;  %v1023_v43 = vmul.f32 %v1006_v34, %v897_v31 }
 0x11a   :  { %v1024_v44 = vmul.f32 %v1010_v38, %v899_v35 }
 0x11b   :  { %v1049_v45 = vadd.f32 %v1032_v41, %v1023_v43 }
 0x11c   :  { %v1050_v46 = vadd.f32 %v1036_v42, %v1024_v44 }
 0x11d   :  { %v1053_v47 = vmax.f32 %v1049_v45, 0.0 }
 0x11e   :  { %v1054_v48 = vmax.f32 %v1050_v46, 0.0 }
 0x120   :  { %1188 = vmatprep.mubr.f32.mxu0 %v1054_v48 }
 0x121   :  { %1189 = vmatmul.mubr.f32.vlgmr.msra.gmra.mrb[8].mxu0 %v1053_v47 }
 0x155   :  { %v937_v49 = vpop.f32.mrb[4].mxu0 }
 0x156   :  { %v978_v50 = vpop.f32.mrb[4].mxu1  ;;  %v939_v52 = vpop.f32.mrb[5].mxu0 }
 0x157   :  { %v979_v51 = vadd.f32 %v978_v50, %v937_v49  ;;  %v980_v54 = vpop.f32.mrb[5].mxu1  ;;  %v941_v56 = vpop.f32.mrb[6].mxu0 }
 0x158   :  { %v981_v55 = vadd.f32 %v980_v54, %v939_v52  ;;  %v982_v57 = vpop.f32.mrb[6].mxu1  ;;  %v942_v58 = vpop.f32.mrb[7].mxu0 }
 0x159   :  { %v983_v59 = vpop.f32.mrb[7].mxu1  ;;  %v1025_v1 = vmul.f32 %v1014_v63, %v979_v51 }
 0x15a   :  { %v988_v61 = vadd.f32 %v981_v55, %v36_v53 }
 0x15b   :  { %v1051_v8 = vadd.f32 %v1040_v2, %v1025_v1 }
 0x15c   :  { %993 = vst.msk [vmem:[#allocation2 + $0x18] sm:$0xff] %vm31_vm0, %v988_v61 }
 0x15d   :  { %v1055_v11 = vmax.f32 %v1051_v8, 0.0 }
 0x163   :  { %v1000_v4 = vld [vmem:[#allocation2 + $0x18] sm:$0xff] }
 0x164   :  { %v1026_v5 = vmul.f32 %v1018_v0, %v1000_v4 }
 0x166   :  { %v1052_v9 = vadd.f32 %v1044_v3, %v1026_v5 }
 0x168   :  { %v1056_v10 = vmax.f32 %v1052_v9, 0.0 }
 0x16a   :  { %1413 = vmatprep.mubr.msk.f32.mxu1 %vm31_vm0, %v1056_v10 }
 0x16b   :  { %1259 = vmatmul.mubr.f32.vlgmr.msra.gmra.mrb[8].mxu1 %v1055_v11 }
 0x1f4   :  { %v1446_v12 = vpop.f32.mrb[8].mxu0 }
 0x1f5   :  { %v1447_v13 = vpop.f32.mrb[9].mxu0 }
 0x1f6   :  { %v1448_v14 = vadd.f32 %v1447_v13, %v1446_v12 }
 0x1f8   :  { %v1191_v16 = vadd.f32 %v1448_v14, %v1411_v15 }
 0x23e   :  { %v1260_v17 = vpop.f32.mrb[8].mxu1 }
 0x23f   :  { %v1261_v18 = vadd.f32 %v1260_v17, %v1191_v16  ;;  %v1262_v19 = vpop.f32.mrb[9].mxu1 }
 0x241   :  { %1264 = vst [vmem:[#allocation3] sm:$0xff] %v1261_v18 }
 0x242   :  { %1721 = shalt.err (!%p1718_p4)
}
 0x243   :  { %s1722_s20 = scalar_lea.hbm %s2363_s6, 128 }
 0x244   :  { %p1723_p5 = scmp.ne.s32.totalorder %s2363_s6, %s1722_s20  ;;  %p1726_p6 = scmp.lt.u32.totalorder %s1722_s20, %s2363_s6 }
 0x246   :  { %p1728_p7 = pnand %p1726_p6, %p1723_p5 }
 0x248   :  { %1731 = shalt.err (!%p1728_p7)
}
 0x249   :  { %1274 = dma.vmem_to_hbm [thread:$0]  %s1272_s16, 128, %s2363_s6, [#allocation4]  }
 0x24a   :  { %1732 = dma.done.wait [#allocation4], 128  }
 0x24b   :  { %1733 = vsyncadd [#allocation4], 4294967168 }
 0x24c   :  { %1278 = vsyncpa [#allocation4], 1 }

</bundles_post_ra>
